<compile_context>
chip_gen: v7x
topology: tpu7x:2x2x1
jax: 0.10.0
libtpu: 0.0.40
codegen_flags: <defaults>
</compile_context>

<pallas_src>
import jax
import jax.numpy as jnp
from jax.experimental import pallas as pl
from jax.experimental.pallas import tpu as pltpu


# --------------------------------------------------------------------------- #
# Kernels
# --------------------------------------------------------------------------- #
def _linear_kernel_fullk(x_ref, w_ref, b_ref, o_ref):
    # Single K block: write (x @ w + bias) straight to the output tile.
    o_ref[...] = (
        jnp.dot(x_ref[...], w_ref[...], preferred_element_type=jnp.float32)
        + b_ref[...]
    ).astype(o_ref.dtype)


def _linear_kernel_ktiled(x_ref, w_ref, b_ref, o_ref, acc_ref):
    # K innermost ("arbitrary"); f32 accumulator resident across K steps.
    k = pl.program_id(2)

    @pl.when(k == 0)
    def _():
        acc_ref[...] = jnp.zeros_like(acc_ref)

    acc_ref[...] += jnp.dot(x_ref[...], w_ref[...],
                            preferred_element_type=jnp.float32)

    @pl.when(k == pl.num_programs(2) - 1)
    def _():
        o_ref[...] = (acc_ref[...] + b_ref[...]).astype(o_ref.dtype)


# --------------------------------------------------------------------------- #
# Planning helpers
# --------------------------------------------------------------------------- #
def _cdiv(a, b):
    return -(-a // b)


def _round_up(x, m):
    return ((x + m - 1) // m) * m


def _pow2_down(start, floor):
    vals, t = [], max(start, floor)
    while t > floor:
        vals.append(t)
        t //= 2
    vals.append(floor)
    return vals


def _vmem_budget():
    """(usable bytes for blocks, vmem_limit_bytes), per TPU generation."""
    try:
        cap = int(pltpu.get_tpu_info().vmem_capacity_bytes)
    except Exception:
        cap = 64 << 20                       # conservative (v7x-sized) fallback
    limit = max(int(cap * 0.80), 24 << 20)   # ~51 MiB on v7x, ~102 MiB v5e/v6e
    budget = max(limit - (6 << 20), 16 << 20)  # headroom for Mosaic scratch
    return budget, limit


def _m_tile(M, target, sub, min_tiles=1):
    """Balanced M tile: multiple of `sub`, <= target, minimal last-tile waste."""
    target = max(target, sub)
    n = max(_cdiv(M, target), min_tiles)
    t = _round_up(_cdiv(M, n), sub)
    return M if t >= M else t        # full-dim block is always legal


# --------------------------------------------------------------------------- #
# Wrapper
# --------------------------------------------------------------------------- #
def time_distributed_linear(x, w, b, *, tm=1024, tn=2048, tk=1024,
                            compute_dtype=None):
    """TimeDistributed(nn.Linear) forward.

    x: (batch, time, in_features)
    w: (in_features, out_features)   (transposed vs. torch's (out, in) storage)
    b: (out_features,)
    returns: (batch, time, out_features)
    """
    if x.ndim <= 2:
        raise RuntimeError(f"No dimension to distribute: {x.shape}")
    batch, time = x.shape[0], x.shape[1]
    d_in = x.shape[-1]
    d_out = w.shape[-1]
    M = batch * time
    out_dtype = x.dtype

    # ---- squash (batch, time, ...) -> (batch*time, ...)  (== _reshape_tensor)
    x2 = x.reshape((M, d_in))
    if compute_dtype is not None:            # bf16 path: halve HBM, ~3x MXU rate
        x2 = x2.astype(compute_dtype)
        w = w.astype(compute_dtype)
    b2 = b.astype(jnp.float32).reshape((1, d_out))

    x_sz = jnp.dtype(x2.dtype).itemsize
    w_sz = jnp.dtype(w.dtype).itemsize
    o_sz = jnp.dtype(out_dtype).itemsize
    # Sublane packing of the row dimension (x and out): 8 f32 / 16 bf16 / 32 i8
    sub = max(32 // min(x_sz, o_sz), 8)

    budget, vmem_limit = _vmem_budget()
    m_cands = _pow2_down(_round_up(max(tm, sub), sub), sub)
    flops = 2 * M * d_in * d_out

    # ---------------------------------------------------------------- Path A
    # Full-K blocks (tk == d_in): no accumulator, no K grid axis, no padding.
    # Weight is fully VMEM-resident whenever tn == d_out fits the budget.
    n_cands = [d_out] + [c for c in _pow2_down(_round_up(max(tn, 128), 128), 128)
                         if c < d_out]
    best = None
    for cand_tn in n_cands:
        n_n = _cdiv(d_out, cand_tn)
        # keep >= 2 M tiles when M is the only parallel axis (v7x: 2 TCs)
        min_tiles = 2 if (n_n == 1 and M >= 256) else 1
        for cand_tm in m_cands:
            tm_c = _m_tile(M, cand_tm, sub, min_tiles)
            n_m = _cdiv(M, tm_c)
            need = (2 * d_in * cand_tn * w_sz       # weight blocks (dbl-buf)
                    + 2 * tm_c * d_in * x_sz        # x blocks
                    + 2 * tm_c * cand_tn * o_sz     # output blocks
                    + 2 * cand_tn * 4)              # bias blocks (f32)
            if need > budget:
                continue
            # HBM traffic for the two grid orders (which operand re-streams)
            if n_n == 1:
                t_mn = t_nm = M * d_in * x_sz + d_in * d_out * w_sz
            else:
                t_mn = M * d_in * x_sz + n_m * d_in * d_out * w_sz
                t_nm = n_n * M * d_in * x_sz + d_in * d_out * w_sz
            traffic = min(t_mn, t_nm) + M * d_out * o_sz
            score = (traffic, n_m * n_n)
            if best is None or score < best[0]:
                best = (score, tm_c, cand_tn, "mn" if t_mn <= t_nm else "nm")

    if best is not None:
        (traffic, _), tm_c, tn_c, order = best
        n_m, n_n = _cdiv(M, tm_c), _cdiv(d_out, tn_c)
        if order == "mn":     # N innermost: x streamed once, w per M tile
            grid = (n_m, n_n)
            x_map = lambda i, j: (i, 0)
            w_map = lambda i, j: (0, j)
            b_map = lambda i, j: (0, j)
            o_map = lambda i, j: (i, j)
        else:                 # M innermost: w streamed once, x per N tile
            grid = (n_n, n_m)
            x_map = lambda j, i: (i, 0)
            w_map = lambda j, i: (0, j)
            b_map = lambda j, i: (0, j)
            o_map = lambda j, i: (i, j)

        out2 = pl.pallas_call(
            _linear_kernel_fullk,
            out_shape=jax.ShapeDtypeStruct((M, d_out), out_dtype),
            grid_spec=pltpu.PrefetchScalarGridSpec(
                num_scalar_prefetch=0,
                grid=grid,
                in_specs=[
                    pl.BlockSpec((tm_c, d_in), x_map),
                    pl.BlockSpec((d_in, tn_c), w_map),
                    pl.BlockSpec((1, tn_c), b_map),
                ],
                out_specs=pl.BlockSpec((tm_c, tn_c), o_map),
            ),
            compiler_params=pltpu.CompilerParams(
                dimension_semantics=("parallel", "parallel"),
                vmem_limit_bytes=vmem_limit,
            ),
            cost_estimate=pl.CostEstimate(
                flops=flops, transcendentals=0, bytes_accessed=int(traffic)),
        )(x2, w, b2)
        return out2.reshape((batch, time) + out2.shape[1:])

    # ---------------------------------------------------------------- Path B
    # Very large d_in: K must be tiled.  Only K is zero-padded (required for
    # correctness); M / N boundary blocks come from cdiv grids, no out slicing.
    k_cap = _round_up(d_in, 128)
    k_cands = sorted({min(c, k_cap) for c in
                      _pow2_down(_round_up(max(tk, 128), 128), 128)},
                     reverse=True)
    nB_cands = [d_out] + [c for c in _pow2_down(_round_up(max(tn, 128), 128), 128)
                          if c < d_out]
    plan = None
    for cand_tk in k_cands:
        for cand_tn in nB_cands:
            for cand_tm in m_cands:
                tm_c = _m_tile(M, cand_tm, sub, 1)
                need = (2 * (tm_c * cand_tk * x_sz
                             + cand_tk * cand_tn * w_sz
                             + cand_tn * 4
                             + tm_c * cand_tn * o_sz)
                        + tm_c * cand_tn * 4)        # f32 accumulator scratch
                if need <= budget:
                    plan = (tm_c, cand_tn, cand_tk)
                    break
            if plan:
                break
        if plan:
            break
    if plan is None:                                  # last-resort minimum
        plan = (_m_tile(M, sub, sub, 1), min(d_out, 128), 128)

    tm_c, tn_c, tk_c = plan
    K_pad = _round_up(d_in, tk_c)
    if K_pad != d_in:                                 # K tail must be zeros
        x2 = jnp.pad(x2, ((0, 0), (0, K_pad - d_in)))
        w = jnp.pad(w, ((0, K_pad - d_in), (0, 0)))
    n_m, n_n, n_k = _cdiv(M, tm_c), _cdiv(d_out, tn_c), K_pad // tk_c
    traffic = (n_n * M * K_pad * x_sz + n_m * K_pad * d_out * w_sz
               + M * d_out * o_sz)

    out2 = pl.pallas_call(
        _linear_kernel_ktiled,
        out_shape=jax.ShapeDtypeStruct((M, d_out), out_dtype),
        grid_spec=pltpu.PrefetchScalarGridSpec(
            num_scalar_prefetch=0,
            grid=(n_m, n_n, n_k),
            in_specs=[
                pl.BlockSpec((tm_c, tk_c), lambda i, j, k: (i, k)),
                pl.BlockSpec((tk_c, tn_c), lambda i, j, k: (k, j)),
                pl.BlockSpec((1, tn_c), lambda i, j, k: (0, j)),
            ],
            out_specs=pl.BlockSpec((tm_c, tn_c), lambda i, j, k: (i, j)),
            scratch_shapes=[pltpu.VMEM((tm_c, tn_c), jnp.float32)],
        ),
        compiler_params=pltpu.CompilerParams(
            dimension_semantics=("parallel", "parallel", "arbitrary"),
            vmem_limit_bytes=vmem_limit,
        ),
        cost_estimate=pl.CostEstimate(
            flops=flops, transcendentals=0, bytes_accessed=int(traffic)),
    )(x2, w, b2)
    return out2.reshape((batch, time) + out2.shape[1:])


# --------------------------------------------------------------------------- #
if __name__ == "__main__":
    key = jax.random.PRNGKey(0)

    # --- Test 1: small deterministic example (batch=2, time=8, 32 -> 64) ----
    kx, kw, kb = jax.random.split(key, 3)
    batch, time, d_in, d_out = 2, 8, 32, 64
    x = jax.random.normal(kx, (batch, time, d_in), dtype=jnp.float32)
    w = jax.random.normal(kw, (d_in, d_out), dtype=jnp.float32) * 0.05
    b = jax.random.normal(kb, (d_out,), dtype=jnp.float32) * 0.01

    out = jax.block_until_ready(time_distributed_linear(x, w, b))
    ref = (x.reshape(batch * time, d_in) @ w + b).reshape(batch, time, d_out)
    assert out.shape == (batch, time, d_out)
    assert jnp.allclose(out, ref, atol=1e-4, rtol=1e-4)

    # --- Test 2: odd sizes -> partial (boundary) M block, unaligned N/K -----
    k2 = jax.random.PRNGKey(1)
    kx2, kw2, kb2 = jax.random.split(k2, 3)
    batch2, time2, d_in2, d_out2 = 3, 100, 300, 200   # M=300, nothing aligned
    x_2 = jax.random.normal(kx2, (batch2, time2, d_in2), dtype=jnp.float32)
    w_2 = jax.random.normal(kw2, (d_in2, d_out2), dtype=jnp.float32) * 0.05
    b_2 = jax.random.normal(kb2, (d_out2,), dtype=jnp.float32) * 0.01

    out_2 = jax.block_until_ready(time_distributed_linear(x_2, w_2, b_2))
    ref_2 = (x_2.reshape(batch2 * time2, d_in2) @ w_2 + b_2).reshape(
        batch2, time2, d_out2)
    assert out_2.shape == (batch2, time2, d_out2)
    assert jnp.allclose(out_2, ref_2, atol=2e-3, rtol=2e-3)

    # --- Test 3: bf16 compute path (f32 accumulate / f32 bias) --------------
    k3 = jax.random.PRNGKey(2)
    kx3, kw3, kb3 = jax.random.split(k3, 3)
    batch3, time3, d_in3, d_out3 = 2, 64, 256, 384
    x_3 = jax.random.normal(kx3, (batch3, time3, d_in3), dtype=jnp.float32)
    w_3 = jax.random.normal(kw3, (d_in3, d_out3), dtype=jnp.float32) * 0.05
    b_3 = jax.random.normal(kb3, (d_out3,), dtype=jnp.float32) * 0.01

    out_3 = jax.block_until_ready(
        time_distributed_linear(x_3, w_3, b_3, compute_dtype=jnp.bfloat16))
    ref_3 = (x_3.reshape(batch3 * time3, d_in3) @ w_3 + b_3).reshape(
        batch3, time3, d_out3)
    assert out_3.shape == (batch3, time3, d_out3)
    assert jnp.allclose(out_3, ref_3, atol=5e-2, rtol=5e-2)

    # TODO(synk): generic TimeDistributed wraps an arbitrary inner module and
    # reshapes kwargs / pass_through; only the Linear inner module is kernelized.
    print("KERNEL_OK")
</pallas_src>

<mosaic_0001>
module attributes {stable_mosaic.version = 11 : i64} {
  func.func @_linear_kernel_fullk(%arg0: i32, %arg1: i32, %arg2: memref<16x32xf32, #tpu.memory_space<vmem>>, %arg3: memref<32x64xf32, #tpu.memory_space<vmem>>, %arg4: memref<1x64xf32, #tpu.memory_space<vmem>>, %arg5: memref<16x64xf32, #tpu.memory_space<vmem>>) attributes {dimension_semantics = [#tpu.dimension_semantics<parallel>, #tpu.dimension_semantics<parallel>], iteration_bounds = array<i64: 1, 1>, scalar_prefetch = 0 : i64, scratch_operands = 0 : i64, tpu.core_type = #tpu.core_type<tc>, window_params = [{transform_indices = @transform_0, window_bounds = array<i64: 16, 32>}, {transform_indices = @transform_1, window_bounds = array<i64: 32, 64>}, {transform_indices = @transform_2, window_bounds = array<i64: 1, 64>}, {transform_indices = @transform_3, window_bounds = array<i64: 16, 64>}]} {
    %c0 = arith.constant 0 : index
    %c0_0 = arith.constant 0 : index
    %0 = vector.load %arg2[%c0, %c0_0] : memref<16x32xf32, #tpu.memory_space<vmem>>, vector<16x32xf32>
    %c0_1 = arith.constant 0 : index
    %c0_2 = arith.constant 0 : index
    %1 = vector.load %arg3[%c0_1, %c0_2] : memref<32x64xf32, #tpu.memory_space<vmem>>, vector<32x64xf32>
    %cst = arith.constant dense<0.000000e+00> : vector<16x64xf32>
    %2 = tpu.matmul %0, %1, %cst {dimension_numbers = #tpu.dot_dimension_numbers<[1], [0], [0], [1], [0, 0, 1, 1], [], []>} : vector<16x32xf32>, vector<32x64xf32>, vector<16x64xf32> -> vector<16x64xf32>
    %c0_3 = arith.constant 0 : index
    %c0_4 = arith.constant 0 : index
    %3 = vector.load %arg4[%c0_3, %c0_4] : memref<1x64xf32, #tpu.memory_space<vmem>>, vector<1x64xf32>
    %4 = vector.broadcast %3 : vector<1x64xf32> to vector<16x64xf32>
    %5 = arith.addf %2, %4 : vector<16x64xf32>
    %c0_5 = arith.constant 0 : index
    %c0_6 = arith.constant 0 : index
    %6 = vector.load %arg5[%c0_5, %c0_6] : memref<16x64xf32, #tpu.memory_space<vmem>>, vector<16x64xf32>
    tpu.vector_store %arg5[%c0_5, %c0_6], %5 {strides = array<i32>} : memref<16x64xf32, #tpu.memory_space<vmem>>, vector<16x64xf32>,
    return
  }
  func.func @transform_0(%arg0: i32, %arg1: i32) -> (i32, i32) {
    %c0_i32 = arith.constant 0 : i32
    %c0_i32_0 = arith.constant 0 : i32
    return %arg0, %c0_i32 : i32, i32
  }
  func.func @transform_1(%arg0: i32, %arg1: i32) -> (i32, i32) {
    %c0_i32 = arith.constant 0 : i32
    %c0_i32_0 = arith.constant 0 : i32
    return %c0_i32, %arg1 : i32, i32
  }
  func.func @transform_2(%arg0: i32, %arg1: i32) -> (i32, i32) {
    %c0_i32 = arith.constant 0 : i32
    %c0_i32_0 = arith.constant 0 : i32
    return %c0_i32, %arg1 : i32, i32
  }
  func.func @transform_3(%arg0: i32, %arg1: i32) -> (i32, i32) {
    %c0_i32 = arith.constant 0 : i32
    return %arg0, %arg1 : i32, i32
  }
}

</mosaic_0001>

<bundles_post_ra>
// kernel: tpu_custom_call.1
= control target key start
LH: loop header
LB: loop body
LE: loop exit
PB: predicated region body
PF: predicated region fallthrough
CT: control target
= control target key end

     0   :  { %8 = vsyncpa [#allocation3], 0  ;;  %s337_s0 = inlined_call_operand.hbm [shape: f32[16,32], index: 0, kind: input, shape index: {}]   ;;  %s338_s1 = inlined_call_operand.hbm [shape: f32[32,64], index: 1, kind: input, shape index: {}]   ;;  %s339_s2 = inlined_call_operand.vmem [shape: f32[1,64], index: 2, kind: input, shape index: {}]   ;;  %s340_s3 = inlined_call_operand.hbm [shape: f32[16,64], index: 3, kind: output, shape index: {}]  }
   0x1   :  { %9 = vsyncpa [#allocation6], 0 }
   0x2   :  { %10 = vsyncpa [#allocation4], 0  ;;  %s264_s12 = smov [#allocation2]   ;;  %s192_s16 = scalar_lea.hbm %s337_s0, 256 }
   0x3   :  { %s16_s13 = sshll.u32 %s264_s12, 4  ;;  %p193_p0 = scmp.ne.s32.totalorder %s337_s0, %s192_s16  ;;  %s17_s13 = int_to_ptr.vmem [resolvable:$true] %s16_s13 }
   0x4   :  { %p196_p1 = scmp.lt.u32.totalorder %s192_s16, %s337_s0 }
   0x6   :  { %p198_p2 = pnand %p196_p1, %p193_p0 }
   0x8   :  { %201 = shalt.err (!%p198_p2)
}
   0x9   :  { %s202_s21 = scalar_lea.vmem %s17_s13, 256  ;;  %p207_p4 = scmp.lt.s32.totalorder %s17_s13, %s17_s13 }
   0xa   :  { %p203_p3 = scmp.ne.s32.totalorder %s17_s13, %s202_s21  ;;  %p208_p5 = scmp.lt.s32.totalorder %s202_s21, %s202_s21 }
   0xc   :  { %p209_p6 = por %p208_p5, %p207_p4 }
   0xe   :  { %p210_p7 = pnand %p209_p6, %p203_p3 }
  0x10   :  { %213 = shalt.err (!%p210_p7)
}
  0x11   :  { %s265_s22 = smov 128   ;;  %s266_s23 = smov 8  }
  0x12   :  { %22 = dma.hbm_to_vmem [thread:$0]  %s337_s0, 256, %s17_s13, [#allocation3], %s265_s22, %s265_s22, %s266_s23  }
  0x13   :  { %s267_s26 = smov [#allocation5]   ;;  %s214_s30 = scalar_lea.hbm %s338_s1, 512 }
  0x14   :  { %s28_s27 = sshll.u32 %s267_s26, 4  ;;  %p215_p8 = scmp.ne.s32.totalorder %s338_s1, %s214_s30  ;;  %s29_s27 = int_to_ptr.vmem [resolvable:$true] %s28_s27 }
  0x15   :  { %p218_p9 = scmp.lt.u32.totalorder %s214_s30, %s338_s1 }
  0x17   :  { %p220_p10 = pnand %p218_p9, %p215_p8 }
  0x19   :  { %223 = shalt.err (!%p220_p10)
}
  0x1a   :  { %s224_s8 = scalar_lea.vmem %s29_s27, 512  ;;  %p229_p12 = scmp.lt.s32.totalorder %s29_s27, %s29_s27 }
  0x1b   :  { %p225_p11 = scmp.ne.s32.totalorder %s29_s27, %s224_s8  ;;  %p230_p13 = scmp.lt.s32.totalorder %s224_s8, %s224_s8 }
  0x1d   :  { %p231_p0 = por %p230_p13, %p229_p12 }
  0x1f   :  { %p232_p1 = pnand %p231_p0, %p225_p11 }
  0x21   :  { %235 = shalt.err (!%p232_p1)
}
  0x22   :  { %34 = dma.hbm_to_vmem [thread:$0]  %s338_s1, 512, %s29_s27, [#allocation6], %s265_s22, %s265_s22, %s266_s23  }
  0x23   :  { %258 = dma.done.wait [#allocation3], 256  }
  0x24   :  { %259 = vsyncadd [#allocation3], 4294967040 }
  0x25   :  { %260 = dma.done.wait [#allocation6], 512  }
  0x26   :  { %261 = vsyncadd [#allocation6], 4294966784  ;;  %vm56_vm0 = vcmask 261120   ;;  %v45_v0 = vld [vmem:[#allocation5] sm:$0xff]  ;;  %v46_v1 = vld [vmem:[#allocation5 + $0x8] sm:$0xff]  ;;  %s268_s11 = smov [#allocation7]  }
  0x27   :  { %v47_v2 = vld [vmem:[#allocation5 + $0x10] sm:$0xff]  ;;  %v179_v3 = vpack.c.bf16 %v46_v1, %v45_v0  ;;  %v48_v4 = vld [vmem:[#allocation5 + $0x18] sm:$0xff]  ;;  %s146_s12 = sshll.u32 %s268_s11, 4  ;;  %vm138_vm1 = vcmask 523264   ;;  %s147_s12 = int_to_ptr.vmem [resolvable:$true] %s146_s12 }
  0x28   :  { %v43_v5 = vld [vmem:[#allocation2] sm:$0xff]  ;;  %v183_v6 = vpack.c.bf16 %v48_v4, %v47_v2  ;;  %v44_v7 = vld [vmem:[#allocation2 + $0x8] sm:$0xff]  ;;  %s236_s13 = scalar_lea.vmem %s147_s12, 256  ;;  %p241_p3 = scmp.lt.s32.totalorder %s147_s12, %s147_s12 }
  0x29   :  { %176 = vmatprep.mubr.msk.f32.mxu0 %vm56_vm0, %v43_v5  ;;  %180 = vmatprep.subr.bf16.mxu0 %v179_v3  ;;  %v159_v8 = vld [vmem:[%s339_s2] ss:$0 sm:$0xff]  ;;  %p237_p2 = scmp.ne.s32.totalorder %s147_s12, %s236_s13  ;;  %p242_p4 = scmp.lt.s32.totalorder %s236_s13, %s236_s13 }
  0x2a   :  { %182 = vmatpush3.bf16.msra.mxu0 %v179_v3 }
  0x2b   :  { %184 = vmatprep.subr.bf16.mxu0 %v183_v6  ;;  %p243_p5 = por %p242_p4, %p241_p3 }
  0x2d   :  { %p244_p6 = pnand %p243_p5, %p237_p2 }
  0x2e   :  { %186 = vmatpush3.bf16.msra.mxu0 %v183_v6 }
  0x31   :  { %177 = vmatmul.mubr.msk.f32.vlgmr.msra.gmra.mrb[0].mxu0 %vm56_vm0, %v44_v7 }
 0x104   :  { %v178_v9 = vpop.f32.mrb[0].mxu0 }
 0x105   :  { %v135_v10 = vadd.f32 %v178_v9, %v159_v8  ;;  %v129_v11 = vpop.f32.mrb[1].mxu0 }
 0x106   :  { %v130_v12 = vadd.f32 %v159_v8, %v129_v11 }
 0x107   :  { %140 = vst.msk [vmem:[#allocation7 + $0x8] sm:$0xff] %vm138_vm1, %v135_v10 }
 0x108   :  { %139 = vst.msk [vmem:[#allocation7] sm:$0xff] %vm138_vm1, %v130_v12 }
 0x109   :  { %247 = shalt.err (!%p244_p6)
}
 0x10a   :  { %s248_s2 = scalar_lea.hbm %s340_s3, 256 }
 0x10b   :  { %p249_p7 = scmp.ne.s32.totalorder %s340_s3, %s248_s2  ;;  %p252_p8 = scmp.lt.u32.totalorder %s248_s2, %s340_s3 }
 0x10d   :  { %p254_p9 = pnand %p252_p8, %p249_p7 }
 0x10f   :  { %257 = shalt.err (!%p254_p9)
}
 0x110   :  { %152 = dma.vmem_to_hbm [thread:$0]  %s147_s12, 256, %s340_s3, [#allocation4], %s265_s22, %s265_s22, %s266_s23  }
 0x111   :  { %262 = dma.done.wait [#allocation4], 256  }
 0x112   :  { %263 = vsyncadd [#allocation4], 4294967040 }
 0x113   :  { %156 = vsyncpa [#allocation3], 1 }
 0x114   :  { %157 = vsyncpa [#allocation6], 1 }
 0x115   :  { %158 = vsyncpa [#allocation4], 1 }

</bundles_post_ra>
